<compile_context>
chip_gen: v7x
topology: tpu7x:2x2x1
jax: 0.10.0
libtpu: 0.0.40
codegen_flags: <defaults>
</compile_context>

<pallas_src>
import functools

import numpy as np
import jax
import jax.numpy as jnp
from jax import lax
from jax.experimental import pallas as pl
from jax.experimental.pallas import tpu as pltpu


# ----------------------------- Pallas kernel ------------------------------- #

def _policy_act_kernel(xin_ref, w1_ref, b1_ref, w2_ref, b2_ref, wh_ref, bh_ref,
                       out_ref, *, action_n):
    xin = xin_ref[...]                                   # [TN, C+O]

    # fused layer 1 (critic | actor): single [C+O, 2H] matmul, f32 accumulate
    h1 = jnp.tanh(
        jnp.dot(xin, w1_ref[...], preferred_element_type=jnp.float32)
        + b1_ref[...])                                   # [TN, 2H] f32

    # fused layer 2: block_diag(cw2, aw2)
    h2 = jnp.tanh(
        jnp.dot(h1.astype(w2_ref.dtype), w2_ref[...],
                preferred_element_type=jnp.float32)
        + b2_ref[...])                                   # [TN, 2H] f32

    # fused heads (kept f32): col 0 = critic value, cols 1..A = logits
    head = jnp.dot(h2, wh_ref[...], preferred_element_type=jnp.float32) + bh_ref[...]

    col = lax.broadcasted_iota(jnp.int32, head.shape, 1)            # [TN, 128]
    neg = jnp.float32(-1e30)
    logits = jnp.where((col >= 1) & (col <= action_n), head, neg)   # mask value + padding

    # deterministic Categorical: action = argmax (first maximal index),
    # log_prob(action) = logit_max - logsumexp = -log(sum(exp(logits - max)))
    m = jnp.max(logits, axis=-1, keepdims=True)                     # [TN, 1]
    big = jnp.int32(2 ** 30)
    action = jnp.min(jnp.where(logits >= m, col, big),
                     axis=-1, keepdims=True) - 1                    # [TN, 1] int32
    logp = -jnp.log(jnp.sum(jnp.exp(logits - m), axis=-1, keepdims=True))

    value = head[:, 0:1]                                            # [TN, 1]

    # lane-dense packed slab: col0 = value, col1 = log_prob, col2 = action
    out_ref[...] = jnp.where(
        col == 0, value,
        jnp.where(col == 1, logp,
                  jnp.where(col == 2, action.astype(jnp.float32), 0.0)))


# ------------------------------ Python wrapper ------------------------------ #

def _round_up(n, m):
    return pl.cdiv(n, m) * m


def _orthogonal(key, in_dim, out_dim, gain):
    """Orthogonal weight [in, out] (so y = x @ W + b)."""
    w = jax.nn.initializers.orthogonal(scale=gain)(key, (in_dim, out_dim), jnp.float32)
    return np.asarray(w)


def _default_compute_dtype():
    """bf16 matmul operands on v6e / v7x (native bf16 MXU), f32 elsewhere (v5e...)."""
    try:
        kind = jax.devices()[0].device_kind.lower()
    except Exception:
        return jnp.float32
    if ("v6" in kind) or ("v7" in kind):
        return jnp.bfloat16
    return jnp.float32


class PolicyPallas:
    """Non-recurrent Policy(MLPBase) + Categorical head; deterministic act() in one Pallas kernel."""

    def __init__(self, obs_dim, cond_dim, action_n, hidden_size=64, seed=0,
                 compute_dtype=None):
        self.obs_dim = obs_dim
        self.cond_dim = cond_dim
        self.action_n = action_n
        self.hidden = H = hidden_size
        C, O, A = cond_dim, obs_dim, action_n
        self.cin = C + O
        self.compute_dtype = (_default_compute_dtype() if compute_dtype is None
                              else compute_dtype)

        keys = jax.random.split(jax.random.PRNGKey(seed), 6)
        g = float(np.sqrt(2))
        # raw (unfused) parameters, stored as [in, out]
        cw1 = _orthogonal(keys[0], O, H, g);      cb1 = np.zeros((H,), np.float32)
        cw2 = _orthogonal(keys[1], H, H, g);      cb2 = np.zeros((H,), np.float32)
        clw = _orthogonal(keys[2], H, 1, g);      clb = np.zeros((1,), np.float32)
        aw1 = _orthogonal(keys[3], C + O, H, g);  ab1 = np.zeros((H,), np.float32)
        aw2 = _orthogonal(keys[4], H, H, g);      ab2 = np.zeros((H,), np.float32)
        dw  = _orthogonal(keys[5], H, A, 0.01);   db  = np.zeros((A,), np.float32)
        self._raw = (cw1, cb1, cw2, cb2, clw, clb, aw1, ab1, aw2, ab2, dw, db)

        # ---- packed / fused weights (critic half = cols[:H], actor half = cols[H:]) ----
        # Fused input is xin = concat([cond, x], -1): rows 0..C-1 = cond, rows C.. = obs.
        H2 = 2 * H
        w1 = np.zeros((C + O, H2), np.float32)
        w1[C:, :H] = cw1                     # critic layer-1 (uses obs only)
        w1[:, H:] = aw1                      # actor layer-1 (cond rows first, then obs)
        b1 = np.concatenate([cb1, ab1])[None, :]

        w2 = np.zeros((H2, H2), np.float32)  # block_diag(cw2, aw2)
        w2[:H, :H] = cw2
        w2[H:, H:] = aw2
        b2 = np.concatenate([cb2, ab2])[None, :]

        self._headw = HEADW = max(128, _round_up(A + 1, 128))
        w_head = np.zeros((H2, HEADW), np.float32)
        w_head[:H, 0] = clw[:, 0]            # critic_linear -> col 0
        w_head[H:, 1:1 + A] = dw             # categorical logits -> cols 1..A
        b_head = np.zeros((1, HEADW), np.float32)
        b_head[0, 0] = clb[0]
        b_head[0, 1:1 + A] = db

        cd = self.compute_dtype
        # tower matmul operands in compute dtype; biases + head stay f32
        self.w1 = jnp.asarray(w1, dtype=cd)
        self.w2 = jnp.asarray(w2, dtype=cd)
        self.b1 = jnp.asarray(b1)
        self.b2 = jnp.asarray(b2)
        self.w_head = jnp.asarray(w_head)
        self.b_head = jnp.asarray(b_head)

        self._fwd = jax.jit(self._make_forward())

    def _make_forward(self):
        kernel = functools.partial(_policy_act_kernel, action_n=self.action_n)
        headw = self._headw
        cin = self.cin
        cd = self.compute_dtype
        w1, b1, w2, b2, wh, bh = (self.w1, self.b1, self.w2, self.b2,
                                  self.w_head, self.b_head)

        def fwd(x, cond):
            N = x.shape[0]
            # merged layer-1 input: host-side concat fuses under jit and is tiny
            xin = jnp.concatenate([cond, x], axis=-1).astype(cd)     # [N, C+O]

            # pad batch to sublane multiple / row-tile; TN<=256 row grid
            TN = min(256, int(_round_up(N, 8)))
            N_pad = int(_round_up(N, TN))
            if N_pad != N:
                xin = jnp.pad(xin, ((0, N_pad - N), (0, 0)))
            grid = (N_pad // TN,)

            const = lambda i: (0, 0)   # weights stay VMEM-resident across grid steps
            slab = pl.pallas_call(
                kernel,
                out_shape=jax.ShapeDtypeStruct((N_pad, headw), jnp.float32),
                grid=grid,
                in_specs=[
                    pl.BlockSpec((TN, cin), lambda i: (i, 0)),
                    pl.BlockSpec(w1.shape, const),
                    pl.BlockSpec(b1.shape, const),
                    pl.BlockSpec(w2.shape, const),
                    pl.BlockSpec(b2.shape, const),
                    pl.BlockSpec(wh.shape, const),
                    pl.BlockSpec(bh.shape, const),
                ],
                out_specs=pl.BlockSpec((TN, headw), lambda i: (i, 0)),
                compiler_params=pltpu.CompilerParams(
                    dimension_semantics=("parallel",),
                    vmem_limit_bytes=32 * 1024 * 1024),
            )(xin, w1, b1, w2, b2, wh, bh)

            packed = slab[:N, :3]            # single read of the payload columns
            value = packed[:, 0:1]
            logp = packed[:, 1:2]
            action = packed[:, 2:3].astype(jnp.int32)
            return value, action, logp

        return fwd

    def act(self, inputs, rnn_hxs, condition_state, deterministic=True):
        """
        inputs:          [batch, obs_dim]
        rnn_hxs:         [batch, hidden]   (passed through, non-recurrent base)
        condition_state: [batch, cond_dim]
        returns: value [batch,1], action [batch,1] int32, action_log_probs [batch,1], rnn_hxs
        """
        # TODO(synk): only the deterministic=True branch (argmax action) is implemented;
        # stochastic sampling / evaluate_actions / entropy / recurrent GRU paths are not.
        x = jnp.asarray(inputs, jnp.float32)
        cond = jnp.asarray(condition_state, jnp.float32)
        value, action, logp = self._fwd(x, cond)
        return value, action, logp, rnn_hxs

    # float64 numpy reference of the unfused network (for the self-check only)
    def reference_forward_np(self, inputs, condition_state):
        cw1, cb1, cw2, cb2, clw, clb, aw1, ab1, aw2, ab2, dw, db = [
            np.asarray(a, np.float64) for a in self._raw]
        x = np.asarray(inputs, np.float64)
        cond = np.asarray(condition_state, np.float64)
        hc = np.tanh(x @ cw1 + cb1)
        hc = np.tanh(hc @ cw2 + cb2)
        value = hc @ clw + clb
        xc = np.concatenate([cond, x], axis=-1)
        ha = np.tanh(xc @ aw1 + ab1)
        ha = np.tanh(ha @ aw2 + ab2)
        logits = ha @ dw + db
        return value, logits


# --------------------------------- self-check -------------------------------- #

def _check(policy, inputs, condition_state, rnn_hxs, tol_v, tol_lp, argmax_slack):
    value, action, logp, rnn_out = policy.act(inputs, rnn_hxs, condition_state,
                                              deterministic=True)
    jax.block_until_ready((value, action, logp, rnn_out))
    batch = inputs.shape[0]
    assert value.shape == (batch, 1)
    assert action.shape == (batch, 1) and action.dtype == jnp.int32
    assert logp.shape == (batch, 1)
    assert rnn_out.shape == rnn_hxs.shape

    ref_value, ref_logits = policy.reference_forward_np(inputs, condition_state)
    v = np.asarray(value)
    a = np.asarray(action)[:, 0]
    lp = np.asarray(logp)[:, 0]
    assert np.all((a >= 0) & (a < policy.action_n))
    np.testing.assert_allclose(v, ref_value, rtol=tol_v, atol=tol_v)
    m = ref_logits.max(axis=-1)
    # chosen action must be a (numerical) maximizer of the reference logits
    assert np.all(ref_logits[np.arange(batch), a] >= m - argmax_slack)
    lse = m + np.log(np.exp(ref_logits - m[:, None]).sum(axis=-1))
    ref_lp = ref_logits[np.arange(batch), a] - lse
    np.testing.assert_allclose(lp, ref_lp, rtol=tol_lp, atol=tol_lp)


if __name__ == "__main__":
    batch, obs_dim, cond_dim, hidden, action_n = 4, 16, 8, 64, 6

    key = jax.random.PRNGKey(0)
    k1, k2, k3, k4 = jax.random.split(key, 4)
    inputs = jax.random.normal(k1, (batch, obs_dim), jnp.float32)
    condition_state = jax.random.normal(k2, (batch, cond_dim), jnp.float32)
    rnn_hxs = jnp.zeros((batch, hidden), jnp.float32)

    # 1) strict numerical check in forced-f32 mode
    policy_f32 = PolicyPallas(obs_dim, cond_dim, action_n, hidden_size=hidden,
                              seed=0, compute_dtype=jnp.float32)
    _check(policy_f32, inputs, condition_state, rnn_hxs,
           tol_v=2e-3, tol_lp=2e-3, argmax_slack=1e-3)

    # 2) device-default mode (bf16 tower operands on v6e/v7x, f32 elsewhere);
    #    tolerances deliberately loosened for the bf16 path (head stays f32).
    policy = PolicyPallas(obs_dim, cond_dim, action_n, hidden_size=hidden, seed=0)
    if policy.compute_dtype == jnp.float32:
        tol_v, tol_lp, slack = 2e-3, 2e-3, 1e-3
    else:
        tol_v, tol_lp, slack = 5e-2, 1e-2, 5e-3
    _check(policy, inputs, condition_state, rnn_hxs, tol_v, tol_lp, slack)

    # 3) rollout-scale batch exercising the multi-tile row grid (TN=256, 2 tiles)
    big_batch = 300
    big_inputs = jax.random.normal(k3, (big_batch, obs_dim), jnp.float32)
    big_cond = jax.random.normal(k4, (big_batch, cond_dim), jnp.float32)
    big_hxs = jnp.zeros((big_batch, hidden), jnp.float32)
    _check(policy, big_inputs, big_cond, big_hxs, tol_v, tol_lp, slack)

    print("KERNEL_OK")
</pallas_src>

<mosaic_0001>
module attributes {stable_mosaic.version = 11 : i64} {
  func.func @_policy_act_kernel(%arg0: i32, %arg1: memref<8x24xf32, #tpu.memory_space<vmem>>, %arg2: memref<24x128xf32, #tpu.memory_space<vmem>>, %arg3: memref<1x128xf32, #tpu.memory_space<vmem>>, %arg4: memref<128x128xf32, #tpu.memory_space<vmem>>, %arg5: memref<1x128xf32, #tpu.memory_space<vmem>>, %arg6: memref<128x128xf32, #tpu.memory_space<vmem>>, %arg7: memref<1x128xf32, #tpu.memory_space<vmem>>, %arg8: memref<8x128xf32, #tpu.memory_space<vmem>>) attributes {dimension_semantics = [#tpu.dimension_semantics<parallel>], iteration_bounds = array<i64: 1>, scalar_prefetch = 0 : i64, scratch_operands = 0 : i64, tpu.core_type = #tpu.core_type<tc>, window_params = [{transform_indices = @transform_0, window_bounds = array<i64: 8, 24>}, {pipeline_mode = #tpu.pipeline_mode<synchronous>, transform_indices = @transform_1, window_bounds = array<i64: 24, 128>}, {pipeline_mode = #tpu.pipeline_mode<synchronous>, transform_indices = @transform_2, window_bounds = array<i64: 1, 128>}, {pipeline_mode = #tpu.pipeline_mode<synchronous>, transform_indices = @transform_3, window_bounds = array<i64: 128, 128>}, {pipeline_mode = #tpu.pipeline_mode<synchronous>, transform_indices = @transform_4, window_bounds = array<i64: 1, 128>}, {pipeline_mode = #tpu.pipeline_mode<synchronous>, transform_indices = @transform_5, window_bounds = array<i64: 128, 128>}, {pipeline_mode = #tpu.pipeline_mode<synchronous>, transform_indices = @transform_6, window_bounds = array<i64: 1, 128>}, {transform_indices = @transform_7, window_bounds = array<i64: 8, 128>}]} {
    %c0 = arith.constant 0 : index
    %c0_0 = arith.constant 0 : index
    %0 = vector.load %arg1[%c0, %c0_0] : memref<8x24xf32, #tpu.memory_space<vmem>>, vector<8x24xf32>
    %c0_1 = arith.constant 0 : index
    %c0_2 = arith.constant 0 : index
    %1 = vector.load %arg2[%c0_1, %c0_2] : memref<24x128xf32, #tpu.memory_space<vmem>>, vector<24x128xf32>
    %cst = arith.constant dense<0.000000e+00> : vector<8x128xf32>
    %2 = tpu.matmul %0, %1, %cst {dimension_numbers = #tpu.dot_dimension_numbers<[1], [0], [0], [1], [0, 0, 1, 1], [], []>} : vector<8x24xf32>, vector<24x128xf32>, vector<8x128xf32> -> vector<8x128xf32>
    %c0_3 = arith.constant 0 : index
    %c0_4 = arith.constant 0 : index
    %3 = vector.load %arg3[%c0_3, %c0_4] : memref<1x128xf32, #tpu.memory_space<vmem>>, vector<1x128xf32>
    %4 = vector.broadcast %3 : vector<1x128xf32> to vector<8x128xf32>
    %5 = arith.addf %2, %4 : vector<8x128xf32>
    %6 = math.tanh %5 : vector<8x128xf32>
    %c0_5 = arith.constant 0 : index
    %c0_6 = arith.constant 0 : index
    %7 = vector.load %arg4[%c0_5, %c0_6] : memref<128x128xf32, #tpu.memory_space<vmem>>, vector<128x128xf32>
    %cst_7 = arith.constant dense<0.000000e+00> : vector<8x128xf32>
    %8 = tpu.matmul %6, %7, %cst_7 {dimension_numbers = #tpu.dot_dimension_numbers<[1], [0], [0], [1], [0, 0, 1, 1], [], []>} : vector<8x128xf32>, vector<128x128xf32>, vector<8x128xf32> -> vector<8x128xf32>
    %c0_8 = arith.constant 0 : index
    %c0_9 = arith.constant 0 : index
    %9 = vector.load %arg5[%c0_8, %c0_9] : memref<1x128xf32, #tpu.memory_space<vmem>>, vector<1x128xf32>
    %10 = vector.broadcast %9 : vector<1x128xf32> to vector<8x128xf32>
    %11 = arith.addf %8, %10 : vector<8x128xf32>
    %12 = math.tanh %11 : vector<8x128xf32>
    %c0_10 = arith.constant 0 : index
    %c0_11 = arith.constant 0 : index
    %13 = vector.load %arg6[%c0_10, %c0_11] : memref<128x128xf32, #tpu.memory_space<vmem>>, vector<128x128xf32>
    %cst_12 = arith.constant dense<0.000000e+00> : vector<8x128xf32>
    %14 = tpu.matmul %12, %13, %cst_12 {dimension_numbers = #tpu.dot_dimension_numbers<[1], [0], [0], [1], [0, 0, 1, 1], [], []>} : vector<8x128xf32>, vector<128x128xf32>, vector<8x128xf32> -> vector<8x128xf32>
    %c0_13 = arith.constant 0 : index
    %c0_14 = arith.constant 0 : index
    %15 = vector.load %arg7[%c0_13, %c0_14] : memref<1x128xf32, #tpu.memory_space<vmem>>, vector<1x128xf32>
    %16 = vector.broadcast %15 : vector<1x128xf32> to vector<8x128xf32>
    %17 = arith.addf %14, %16 : vector<8x128xf32>
    %18 = tpu.iota {dimensions = array<i32: 1>} : vector<8x128xi32>
    %c1_i32 = arith.constant 1 : i32
    %19 = vector.broadcast %c1_i32 : i32 to vector<8x128xi32>
    %20 = arith.cmpi sge, %18, %19 : vector<8x128xi32>
    %c6_i32 = arith.constant 6 : i32
    %21 = vector.broadcast %c6_i32 : i32 to vector<8x128xi32>
    %22 = arith.cmpi sle, %18, %21 : vector<8x128xi32>
    %23 = arith.andi %20, %22 : vector<8x128xi1>
    %cst_15 = arith.constant -1.000000e+30 : f32
    %24 = vector.broadcast %cst_15 : f32 to vector<8x128xf32>
    %25 = arith.select %23, %17, %24 : vector<8x128xi1>, vector<8x128xf32>
    %cst_16 = arith.constant dense<0xFF800000> : vector<8xf32>
    %26 = vector.multi_reduction <maximumf>, %25, %cst_16 [1] : vector<8x128xf32> to vector<8xf32>
    %27 = vector.shape_cast %26 : vector<8xf32> to vector<8x1xf32>
    %28 = vector.broadcast %27 : vector<8x1xf32> to vector<8x128xf32>
    %29 = arith.cmpf oge, %25, %28 : vector<8x128xf32>
    %c1073741824_i32 = arith.constant 1073741824 : i32
    %30 = vector.broadcast %c1073741824_i32 : i32 to vector<8x128xi32>
    %31 = arith.select %29, %18, %30 : vector<8x128xi1>, vector<8x128xi32>
    %cst_17 = arith.constant dense<2147483647> : vector<8xi32>
    %32 = vector.multi_reduction <minsi>, %31, %cst_17 [1] : vector<8x128xi32> to vector<8xi32>
    %33 = vector.shape_cast %32 : vector<8xi32> to vector<8x1xi32>
    %c1_i32_18 = arith.constant 1 : i32
    %34 = vector.broadcast %c1_i32_18 : i32 to vector<8x1xi32>
    %35 = arith.subi %33, %34 : vector<8x1xi32>
    %36 = vector.broadcast %27 : vector<8x1xf32> to vector<8x128xf32>
    %37 = arith.subf %25, %36 : vector<8x128xf32>
    %38 = math.exp %37 : vector<8x128xf32>
    %cst_19 = arith.constant dense<0.000000e+00> : vector<8xf32>
    %39 = vector.multi_reduction <add>, %38, %cst_19 [1] : vector<8x128xf32> to vector<8xf32>
    %40 = vector.shape_cast %39 : vector<8xf32> to vector<8x1xf32>
    %41 = math.log %40 : vector<8x1xf32>
    %cst_20 = arith.constant 0.000000e+00 : f32
    %42 = vector.broadcast %cst_20 : f32 to vector<8x1xf32>
    %43 = arith.subf %42, %41 : vector<8x1xf32>
    %44 = vector.extract_strided_slice %17 {offsets = [0, 0], sizes = [8, 1], strides = [1, 1]} : vector<8x128xf32> to vector<8x1xf32>
    %c0_i32 = arith.constant 0 : i32
    %45 = vector.broadcast %c0_i32 : i32 to vector<8x128xi32>
    %46 = arith.cmpi eq, %18, %45 : vector<8x128xi32>
    %c1_i32_21 = arith.constant 1 : i32
    %47 = vector.broadcast %c1_i32_21 : i32 to vector<8x128xi32>
    %48 = arith.cmpi eq, %18, %47 : vector<8x128xi32>
    %c2_i32 = arith.constant 2 : i32
    %49 = vector.broadcast %c2_i32 : i32 to vector<8x128xi32>
    %50 = arith.cmpi eq, %18, %49 : vector<8x128xi32>
    %51 = arith.sitofp %35 : vector<8x1xi32> to vector<8x1xf32>
    %cst_22 = arith.constant 0.000000e+00 : f32
    %52 = vector.shape_cast %51 : vector<8x1xf32> to vector<8x1xf32>
    %53 = vector.broadcast %52 : vector<8x1xf32> to vector<8x128xf32>
    %54 = vector.broadcast %cst_22 : f32 to vector<8x128xf32>
    %55 = arith.select %50, %53, %54 : vector<8x128xi1>, vector<8x128xf32>
    %56 = vector.shape_cast %43 : vector<8x1xf32> to vector<8x1xf32>
    %57 = vector.broadcast %56 : vector<8x1xf32> to vector<8x128xf32>
    %58 = arith.select %48, %57, %55 : vector<8x128xi1>, vector<8x128xf32>
    %59 = vector.shape_cast %44 : vector<8x1xf32> to vector<8x1xf32>
    %60 = vector.broadcast %59 : vector<8x1xf32> to vector<8x128xf32>
    %61 = arith.select %46, %60, %58 : vector<8x128xi1>, vector<8x128xf32>
    %c0_23 = arith.constant 0 : index
    %c0_24 = arith.constant 0 : index
    %62 = vector.load %arg8[%c0_23, %c0_24] : memref<8x128xf32, #tpu.memory_space<vmem>>, vector<8x128xf32>
    tpu.vector_store %arg8[%c0_23, %c0_24], %61 {strides = array<i32>} : memref<8x128xf32, #tpu.memory_space<vmem>>, vector<8x128xf32>,
    return
  }
  func.func @transform_0(%arg0: i32) -> (i32, i32) {
    %c0_i32 = arith.constant 0 : i32
    %c0_i32_0 = arith.constant 0 : i32
    return %arg0, %c0_i32 : i32, i32
  }
  func.func @transform_1(%arg0: i32) -> (i32, i32) {
    %c0_i32 = arith.constant 0 : i32
    %c0_i32_0 = arith.constant 0 : i32
    %c0_i32_1 = arith.constant 0 : i32
    return %c0_i32, %c0_i32_0 : i32, i32
  }
  func.func @transform_2(%arg0: i32) -> (i32, i32) {
    %c0_i32 = arith.constant 0 : i32
    %c0_i32_0 = arith.constant 0 : i32
    %c0_i32_1 = arith.constant 0 : i32
    return %c0_i32, %c0_i32_0 : i32, i32
  }
  func.func @transform_3(%arg0: i32) -> (i32, i32) {
    %c0_i32 = arith.constant 0 : i32
    %c0_i32_0 = arith.constant 0 : i32
    %c0_i32_1 = arith.constant 0 : i32
    return %c0_i32, %c0_i32_0 : i32, i32
  }
  func.func @transform_4(%arg0: i32) -> (i32, i32) {
    %c0_i32 = arith.constant 0 : i32
    %c0_i32_0 = arith.constant 0 : i32
    %c0_i32_1 = arith.constant 0 : i32
    return %c0_i32, %c0_i32_0 : i32, i32
  }
  func.func @transform_5(%arg0: i32) -> (i32, i32) {
    %c0_i32 = arith.constant 0 : i32
    %c0_i32_0 = arith.constant 0 : i32
    %c0_i32_1 = arith.constant 0 : i32
    return %c0_i32, %c0_i32_0 : i32, i32
  }
  func.func @transform_6(%arg0: i32) -> (i32, i32) {
    %c0_i32 = arith.constant 0 : i32
    %c0_i32_0 = arith.constant 0 : i32
    %c0_i32_1 = arith.constant 0 : i32
    return %c0_i32, %c0_i32_0 : i32, i32
  }
  func.func @transform_7(%arg0: i32) -> (i32, i32) {
    %c0_i32 = arith.constant 0 : i32
    %c0_i32_0 = arith.constant 0 : i32
    return %arg0, %c0_i32 : i32, i32
  }
}

</mosaic_0001>

<bundles_post_ra>
// kernel: fwd.1
= control target key start
LH: loop header
LB: loop body
LE: loop exit
PB: predicated region body
PF: predicated region fallthrough
CT: control target
= control target key end

     0   :  { %12 = vsyncpa [#allocation3], 0  ;;  %s733_s0 = inlined_call_operand.vmem [shape: f32[8,24], index: 0, kind: input, shape index: {}]   ;;  %s734_s1 = inlined_call_operand.vmem [shape: f32[24,128], index: 1, kind: input, shape index: {}]   ;;  %s735_s2 = inlined_call_operand.vmem [shape: f32[1,128], index: 2, kind: input, shape index: {}, may-alias: {2,4,6}]   ;;  %s736_s3 = inlined_call_operand.hbm [shape: f32[128,128], index: 3, kind: input, shape index: {}]   ;;  %s737_s4 = inlined_call_operand.vmem [shape: f32[1,128], index: 4, kind: input, shape index: {}, may-alias: {2,4,6}]   ;;  %s738_s5 = inlined_call_operand.hbm [shape: f32[128,128], index: 5, kind: input, shape index: {}]   ;;  %s739_s6 = inlined_call_operand.vmem [shape: f32[1,128], index: 6, kind: input, shape index: {}, may-alias: {2,4,6}]   ;;  %s740_s7 = inlined_call_operand.vmem [shape: f32[8,128], index: 7, kind: output, shape index: {}]  }
   0x1   :  { %13 = vsyncpa [#allocation5], 0  ;;  %s617_s24 = smov [#allocation2]   ;;  %s569_s28 = scalar_lea.hbm %s736_s3, 2048 }
   0x2   :  { %s25_s25 = sshll.u32 %s617_s24, 4  ;;  %p570_p0 = scmp.ne.s32.totalorder %s736_s3, %s569_s28  ;;  %s26_s25 = int_to_ptr.vmem [resolvable:$true] %s25_s25 }
   0x3   :  { %p573_p1 = scmp.lt.u32.totalorder %s569_s28, %s736_s3 }
   0x5   :  { %p575_p2 = pnand %p573_p1, %p570_p0 }
   0x7   :  { %578 = shalt.err (!%p575_p2)
}
   0x8   :  { %s579_s10 = scalar_lea.vmem %s26_s25, 2048  ;;  %p584_p4 = scmp.lt.s32.totalorder %s26_s25, %s26_s25 }
   0x9   :  { %p580_p3 = scmp.ne.s32.totalorder %s26_s25, %s579_s10  ;;  %p585_p5 = scmp.lt.s32.totalorder %s579_s10, %s579_s10 }
   0xb   :  { %p586_p6 = por %p585_p5, %p584_p4 }
   0xd   :  { %p587_p7 = pnand %p586_p6, %p580_p3 }
   0xf   :  { %590 = shalt.err (!%p587_p7)
}
  0x10   :  { %s618_s11 = smov 128   ;;  %s619_s12 = smov 8  }
  0x11   :  { %31 = dma.hbm_to_vmem [thread:$0]  %s736_s3, 2048, %s26_s25, [#allocation3], %s618_s11, %s618_s11, %s619_s12  }
  0x12   :  { %s620_s15 = smov [#allocation4]   ;;  %s591_s19 = scalar_lea.hbm %s738_s5, 2048 }
  0x13   :  { %s39_s16 = sshll.u32 %s620_s15, 4  ;;  %p592_p8 = scmp.ne.s32.totalorder %s738_s5, %s591_s19  ;;  %s40_s16 = int_to_ptr.vmem [resolvable:$true] %s39_s16 }
  0x14   :  { %p595_p9 = scmp.lt.u32.totalorder %s591_s19, %s738_s5 }
  0x16   :  { %p597_p10 = pnand %p595_p9, %p592_p8 }
  0x18   :  { %600 = shalt.err (!%p597_p10)
}
  0x19   :  { %s601_s24 = scalar_lea.vmem %s40_s16, 2048  ;;  %p606_p12 = scmp.lt.s32.totalorder %s40_s16, %s40_s16 }
  0x1a   :  { %p602_p11 = scmp.ne.s32.totalorder %s40_s16, %s601_s24  ;;  %p607_p13 = scmp.lt.s32.totalorder %s601_s24, %s601_s24 }
  0x1c   :  { %p608_p0 = por %p607_p13, %p606_p12 }
  0x1e   :  { %p609_p1 = pnand %p608_p0, %p602_p11 }
  0x20   :  { %612 = shalt.err (!%p609_p1)
}
  0x21   :  { %45 = dma.hbm_to_vmem [thread:$0]  %s738_s5, 2048, %s40_s16, [#allocation5], %s618_s11, %s618_s11, %s619_s12  }
  0x22   :  { %613 = dma.done.wait [#allocation3], 2048  }
  0x23   :  { %614 = vsyncadd [#allocation3], 4294965248 }
  0x24   :  { %615 = dma.done.wait [#allocation5], 2048  }
  0x25   :  { %616 = vsyncadd [#allocation5], 4294965248  ;;  %v621_v0 = vmov 0.0|0.0   ;;  %vm622_vm0 = vmmov 0   ;;  %v623_v1 = vmov 0.0   ;;  %v55_v2 = vld [vmem:[%s734_s1] sm:$0xff] }
  0x26   :  { %501 = vmatprep.subr.bf16.mxu0 %v621_v0  ;;  %428 = vmatprep.mubr.msk.f32.mxu0 %vm622_vm0, %v623_v1  ;;  %v56_v3 = vld [vmem:[%s734_s1 + $0x8] sm:$0xff]  ;;  %v140_v5 = vld [vmem:[#allocation2] sm:$0xff]  ;;  %v142_v8 = vld [vmem:[#allocation2 + $0x10] sm:$0xff]  ;;  %vm65_vm1 = vcmask 195584  }
  0x27   :  { %504 = vmatprep.subr.bf16.mxu1 %v621_v0  ;;  %463 = vmatprep.mubr.msk.f32.mxu1 %vm622_vm0, %v623_v1  ;;  %v502_v4 = vpack.c.bf16 %v56_v3, %v55_v2  ;;  %v141_v6 = vld [vmem:[#allocation2 + $0x8] sm:$0xff]  ;;  %v143_v9 = vld [vmem:[#allocation2 + $0x18] sm:$0xff]  ;;  %v57_v10 = vld [vmem:[%s734_s1 + $0x10] sm:$0xff]  ;;  %v327_v2 = vlaneseq }
  0x28   :  { %v505_v7 = vpack.c.bf16 %v141_v6, %v140_v5  ;;  %v508_v11 = vpack.c.bf16 %v143_v9, %v142_v8  ;;  %v54_v12 = vld [vmem:[%s733_s0] sm:$0xff]  ;;  %v145_v14 = vld [vmem:[#allocation2 + $0x28] sm:$0xff]  ;;  %v146_v16 = vld [vmem:[#allocation2 + $0x30] sm:$0xff]  ;;  %v624_v8 = vmov 0  }
  0x29   :  { %503 = vmatpush3.bf16.msra.mxu0 %v502_v4  ;;  %v144_v13 = vld [vmem:[#allocation2 + $0x20] sm:$0xff]  ;;  %v147_v17 = vld [vmem:[#allocation2 + $0x38] sm:$0xff]  ;;  %v149_v20 = vld [vmem:[#allocation2 + $0x48] sm:$0xff]  ;;  %v328_v3 = vand.u32 127, %v327_v2  ;;  %560 = vset.pattern.permute.xlu0 %v624_v8 }
  0x2a   :  { %426 = vmatprep.subr.mxu0 %v623_v1  ;;  %506 = vmatpush3.bf16.msra.mxu1 %v505_v7  ;;  %v511_v15 = vpack.c.bf16 %v145_v14, %v144_v13  ;;  %v514_v18 = vpack.c.bf16 %v147_v17, %v146_v16  ;;  %v148_v19 = vld [vmem:[#allocation2 + $0x40] sm:$0xff]  ;;  %v150_v22 = vld [vmem:[#allocation2 + $0x50] sm:$0xff]  ;;  %v151_v23 = vld [vmem:[#allocation2 + $0x58] sm:$0xff] }
  0x2b   :  { %507 = vmatprep.subr.bf16.mxu1 %v621_v0  ;;  %v517_v21 = vpack.c.bf16 %v149_v20, %v148_v19  ;;  %v520_v24 = vpack.c.bf16 %v151_v23, %v150_v22  ;;  %v152_v25 = vld [vmem:[#allocation2 + $0x60] sm:$0xff]  ;;  %v153_v26 = vld [vmem:[#allocation2 + $0x68] sm:$0xff]  ;;  %v154_v28 = vld [vmem:[#allocation2 + $0x70] sm:$0xff]  ;;  %vm329_vm2 = vcmp.ge.s32.totalorder %v328_v3, 1  ;;  %vm330_vm3 = vcmp.le.s32.totalorder %v328_v3, 6 }
  0x2c   :  { %v523_v27 = vpack.c.bf16 %v153_v26, %v152_v25  ;;  %v155_v29 = vld [vmem:[#allocation2 + $0x78] sm:$0xff]  ;;  %v234_v31 = vld [vmem:[#allocation4] sm:$0xff]  ;;  %v235_v32 = vld [vmem:[#allocation4 + $0x8] sm:$0xff]  ;;  %vm362_vm7 = vcmp.eq.s32.totalorder %v328_v3, 2  ;;  %vm361_vm8 = vcmp.eq.s32.totalorder %v328_v3, 1  ;;  %vm360_vm9 = vcmp.eq.s32.totalorder %v328_v3, 0 }
  0x2d   :  { %427 = vmatpush3.msra.mxu0 %v57_v10  ;;  %v526_v30 = vpack.c.bf16 %v155_v29, %v154_v28  ;;  %v236_v33 = vld [vmem:[#allocation4 + $0x10] sm:$0xff]  ;;  %v529_v34 = vpack.c.bf16 %v235_v32, %v234_v31  ;;  %v237_v35 = vld [vmem:[#allocation4 + $0x18] sm:$0xff]  ;;  %v238_v37 = vld [vmem:[#allocation4 + $0x20] sm:$0xff] }
  0x2e   :  { %429 = vmatmul.mubr.msk.f32.vlgmr.msra.gmra.mrb[0].mxu0 %vm65_vm1, %v54_v12  ;;  %509 = vmatpush3.bf16.msra.mxu1 %v508_v11  ;;  %v532_v36 = vpack.c.bf16 %v237_v35, %v236_v33  ;;  %v239_v38 = vld [vmem:[#allocation4 + $0x28] sm:$0xff]  ;;  %v240_v40 = vld [vmem:[#allocation4 + $0x30] sm:$0xff]  ;;  %v241_v41 = vld [vmem:[#allocation4 + $0x38] sm:$0xff] }
  0x2f   :  { %510 = vmatprep.subr.bf16.mxu1 %v621_v0  ;;  %528 = vmatprep.subr.bf16.mxu0 %v621_v0  ;;  %v535_v39 = vpack.c.bf16 %v239_v38, %v238_v37  ;;  %v538_v42 = vpack.c.bf16 %v241_v41, %v240_v40  ;;  %v242_v43 = vld [vmem:[#allocation4 + $0x40] sm:$0xff]  ;;  %v243_v44 = vld [vmem:[#allocation4 + $0x48] sm:$0xff]  ;;  %v244_v51 = vld [vmem:[#allocation4 + $0x50] sm:$0xff] }
  0x30   :  { %498 = vmatprep.mubr.msk.f32.mxu0 %vm622_vm0, %v623_v1  ;;  %530 = vmatpush3.bf16.msra.mxu0 %v529_v34  ;;  %v541_v45 = vpack.c.bf16 %v243_v44, %v242_v43  ;;  %v379_v46 = vld [vmem:[%s735_s2] ss:$0 sm:$0xff]  ;;  %v245_v52 = vld [vmem:[#allocation4 + $0x58] sm:$0xff]  ;;  %v247_v55 = vld [vmem:[#allocation4 + $0x68] sm:$0xff] }
  0x31   :  { %531 = vmatprep.subr.bf16.mxu0 %v621_v0  ;;  %v544_v53 = vpack.c.bf16 %v245_v52, %v244_v51  ;;  %v246_v54 = vld [vmem:[#allocation4 + $0x60] sm:$0xff]  ;;  %v248_v57 = vld [vmem:[#allocation4 + $0x70] sm:$0xff]  ;;  %v249_v58 = vld [vmem:[#allocation4 + $0x78] sm:$0xff] }
  0x32   :  { %512 = vmatpush3.bf16.msra.mxu1 %v511_v15  ;;  %v547_v56 = vpack.c.bf16 %v247_v55, %v246_v54  ;;  %v550_v59 = vpack.c.bf16 %v249_v58, %v248_v57  ;;  %v381_v60 = vld [vmem:[%s737_s4] ss:$0 sm:$0xff]  ;;  %vm331_vm4 = vmand %vm329_vm2, %vm330_vm3 }
  0x33   :  { %513 = vmatprep.subr.bf16.mxu1 %v621_v0  ;;  %v382_v4 = vld [vmem:[%s739_s6] ss:$0 sm:$0xff] }
  0x34   :  { %533 = vmatpush3.bf16.msra.mxu0 %v532_v36 }
  0x35   :  { %534 = vmatprep.subr.bf16.mxu0 %v621_v0 }
  0x36   :  { %515 = vmatpush3.bf16.msra.mxu1 %v514_v18 }
  0x37   :  { %516 = vmatprep.subr.bf16.mxu1 %v621_v0 }
  0x38   :  { %536 = vmatpush3.bf16.msra.mxu0 %v535_v39 }
  0x39   :  { %537 = vmatprep.subr.bf16.mxu0 %v621_v0 }
  0x3a   :  { %518 = vmatpush3.bf16.msra.mxu1 %v517_v21 }
  0x3b   :  { %519 = vmatprep.subr.bf16.mxu1 %v621_v0 }
  0x3c   :  { %539 = vmatpush3.bf16.msra.mxu0 %v538_v42 }
  0x3d   :  { %540 = vmatprep.subr.bf16.mxu0 %v621_v0 }
  0x3e   :  { %521 = vmatpush3.bf16.msra.mxu1 %v520_v24 }
  0x3f   :  { %522 = vmatprep.subr.bf16.mxu1 %v621_v0 }
  0x40   :  { %542 = vmatpush3.bf16.msra.mxu0 %v541_v45 }
  0x41   :  { %543 = vmatprep.subr.bf16.mxu0 %v621_v0 }
  0x42   :  { %524 = vmatpush3.bf16.msra.mxu1 %v523_v27 }
  0x43   :  { %525 = vmatprep.subr.bf16.mxu1 %v621_v0 }
  0x44   :  { %545 = vmatpush3.bf16.msra.mxu0 %v544_v53 }
  0x45   :  { %546 = vmatprep.subr.bf16.mxu0 %v621_v0 }
  0x46   :  { %527 = vmatpush3.bf16.msra.mxu1 %v526_v30 }
  0x48   :  { %548 = vmatpush3.bf16.msra.mxu0 %v547_v56 }
  0x49   :  { %549 = vmatprep.subr.bf16.mxu0 %v621_v0 }
  0x4c   :  { %551 = vmatpush3.bf16.msra.mxu0 %v550_v59 }
 0x101   :  { %v135_v47 = vpop.f32.mrb[0].mxu0 }
 0x102   :  { %v136_v48 = vadd.f32 %v379_v46, %v135_v47  ;;  %v430_v49 = vpop.f32.mrb[1].mxu0 }
 0x104   :  { %561 = vtanh.f32 %v136_v48 }
 0x10e   :  { %v562_v50 = vpop.eup %561 }
 0x10f   :  { %464 = vmatmul.mubr.f32.vlgmr.msra.gmra.mrb[0].mxu1 %v562_v50 }
 0x1e2   :  { %v229_v61 = vpop.f32.mrb[0].mxu1 }
 0x1e3   :  { %v230_v62 = vadd.f32 %v381_v60, %v229_v61  ;;  %v465_v63 = vpop.f32.mrb[1].mxu1 }
 0x1e5   :  { %563 = vtanh.f32 %v230_v62 }
 0x1ef   :  { %v564_v1 = vpop.eup %563 }
 0x1f0   :  { %499 = vmatmul.mubr.f32.vlgmr.msra.gmra.mrb[2].mxu0 %v564_v1 }
 0x2c3   :  { %v323_v0 = vpop.f32.mrb[2].mxu0 }
 0x2c4   :  { %v324_v5 = vadd.f32 %v382_v4, %v323_v0  ;;  %v500_v6 = vpop.f32.mrb[3].mxu0 }
 0x2c6   :  { %v332_v7 = vsel %vm331_vm4, %v324_v5, -1e+30 }
 0x2c7   :  { %333 = vmax.xlane.f32.xlu0 %v332_v7 }
 0x354   :  { %v334_v9 = vpop.xlane.xlu0 %333 }
 0x355   :  { %vm335_vm5 = vcmp.ge.f32.partialorder %v332_v7, %v334_v9  ;;  %v352_v10 = vsub.f32 %v332_v7, %v334_v9 }
 0x356   :  { %v336_v11 = vsel %vm335_vm5, %v328_v3, 1073741824 }
 0x357   :  { %v353_v12 = vmul.f32 1.442695, %v352_v10  ;;  %v338_v13 = vshra.s32 %v336_v11, 16  ;;  %v337_v16 = vand.u32 65535, %v336_v11 }
 0x359   :  { %v340_v14 = vcvt.s32.f32 %v338_v13  ;;  %565 = vpow2.f32 %v353_v12  ;;  %v339_v18 = vcvt.s32.f32 %v337_v16 }
 0x35b   :  { %341 = vmin.xlane.f32.xlu0 %v340_v14 }
 0x363   :  { %v566_v15 = vpop.eup %565 }
 0x364   :  { %355 = vadd.xlane.f32.xlu1 %v566_v15 }
 0x371   :  { %368 = vperm.xlu0 %560, %v324_v5  }
 0x3e8   :  { %v342_v17 = vpop.xlane.xlu0 %341 }
 0x3e9   :  { %vm343_vm6 = vcmp.eq.f32.partialorder %v340_v14, %v342_v17  ;;  %v348_v21 = vcvt.f32.s32 %v342_v17 }
 0x3ea   :  { %v344_v19 = vsel %vm343_vm6, %v339_v18, inf }
 0x3eb   :  { %345 = vmin.xlane.f32.xlu1 %v344_v19  ;;  %v349_v24 = vshll.u32 %v348_v21, 16 }
 0x3f0   :  { %v369_v32 = vpop.permute.xlu0 %368 }
 0x3f1   :  { %v356_v20 = vpop.xlane.xlu1 %355 }
 0x3f2   :  { %567 = vlog2.f32 %v356_v20 }
 0x3fc   :  { %v568_v23 = vpop.eup %567 }
 0x3fd   :  { %v358_v27 = vmul.f32 0.6931472, %v568_v23 }
 0x3ff   :  { %v359_v30 = vsub.f32 0.0, %v358_v27 }
 0x478   :  { %v346_v22 = vpop.xlane.xlu1 %345 }
 0x479   :  { %v347_v25 = vcvt.f32.s32 %v346_v22 }
 0x47b   :  { %v350_v26 = vadd.s32 %v349_v24, %v347_v25 }
 0x47d   :  { %v383_v28 = vadd.s32 4294967295, %v350_v26 }
 0x47f   :  { %v363_v29 = vcvt.s32.f32 %v383_v28 }
 0x481   :  { %v364_v31 = vsel %vm362_vm7, %v363_v29, 0.0 }
 0x482   :  { %v365_v33 = vsel %vm361_vm8, %v359_v30, %v364_v31 }
 0x483   :  { %v371_v34 = vsel %vm360_vm9, %v369_v32, %v365_v33 }
 0x484   :  { %372 = vst [vmem:[%s740_s7] sm:$0xff] %v371_v34 }
 0x485   :  { %377 = vsyncpa [#allocation3], 1 }
 0x486   :  { %378 = vsyncpa [#allocation5], 1 }

</bundles_post_ra>
